<compile_context>
chip_gen: v7x
topology: tpu7x:2x2x1
jax: 0.10.0
libtpu: 0.0.40
codegen_flags: <defaults>
</compile_context>

<pallas_src>
import functools

import jax
import jax.numpy as jnp
from jax.experimental import pallas as pl
from jax.experimental.pallas import tpu as pltpu


# ---------------------------------------------------------------------------
# Kernel A: fused Linear + Sigmoid with a full-K block (no reduction axis).
# ---------------------------------------------------------------------------
def _linear_sigmoid_fullk_kernel(x_ref, w_ref, b_ref, o_ref):
    # x:(tm, K) f32, w:(K, tn) bf16, b:(1, tn) f32 -> o:(tm, tn) f32
    z = jnp.dot(
        x_ref[...].astype(w_ref.dtype),      # bf16 x bf16 on the MXU ...
        w_ref[...],
        preferred_element_type=jnp.float32,  # ... with f32 accumulation
    )
    o_ref[...] = jax.nn.sigmoid(z + b_ref[...]).astype(o_ref.dtype)


# ---------------------------------------------------------------------------
# Kernel B: split-K variant (f32 VMEM accumulator) for K too large for VMEM
# (needed at the real 12288/12000 dims; not used by the demo forward pass).
# ---------------------------------------------------------------------------
def _linear_sigmoid_splitk_kernel(x_ref, w_ref, b_ref, o_ref, acc_ref):
    @pl.when(pl.program_id(2) == 0)
    def _():
        acc_ref[...] = jnp.zeros_like(acc_ref)

    acc_ref[...] += jnp.dot(
        x_ref[...].astype(w_ref.dtype),
        w_ref[...],
        preferred_element_type=jnp.float32,
    )

    @pl.when(pl.program_id(2) == pl.num_programs(2) - 1)
    def _():
        o_ref[...] = jax.nn.sigmoid(acc_ref[...] + b_ref[...]).astype(o_ref.dtype)


# ---------------------------------------------------------------------------
# Tiling helpers
# ---------------------------------------------------------------------------
def _pick_tn(n, max_tn=1024):
    """Largest lane-dense (multiple-of-128) tile dividing n, preferring >= 2
    blocks on the parallel N axis so both v7x TensorCores pull from HBM."""
    best = n
    t = min(max_tn, n)
    t -= t % 128
    while t >= 128:
        if n % t == 0:
            if n // t >= 2:
                return t
            best = t
        t -= 128
    return best


@functools.partial(jax.jit, static_argnames=("tm", "tn", "tk"))
def linear_sigmoid(x, w, b, *, tm, tn, tk=None):
    """y = sigmoid(x @ w + b); x:(M,K) f32, w:(K,N) bf16, b:(1,N) f32 -> (M,N) f32.

    tk=None (default) collapses the reduction axis into a single full-K block.
    Pass tk (multiple of 128) only when K is too large to fit VMEM.
    """
    M, K = x.shape
    K2, N = w.shape
    assert K == K2 and b.shape == (1, N)
    # TODO(synk): the real CelebA dims (12288/12000/3000) are not multiples of
    # 128 and need pl.cdiv grids plus padding/masking on the N (and K) axes.
    assert M % tm == 0 and N % tn == 0
    assert N % 128 == 0 and K % 128 == 0

    # Explicit VMEM budget: double-buffered input/output tiles + headroom,
    # clamped to a value that is safe on v5e/v6e/v7x alike.
    kblk = K if tk is None else tk
    tile_bytes = (
        tm * kblk * x.dtype.itemsize      # x block
        + kblk * tn * w.dtype.itemsize    # w block (bf16)
        + tn * b.dtype.itemsize           # bias block
        + tm * tn * 4                     # output block (f32)
    )
    vmem_limit = int(min(max(4 * tile_bytes, 16 * 1024 * 1024),
                         48 * 1024 * 1024))

    if tk is None:
        # Full-K block: 2-D grid, no accumulator, minimal per-step overhead.
        return pl.pallas_call(
            _linear_sigmoid_fullk_kernel,
            out_shape=jax.ShapeDtypeStruct((M, N), x.dtype),
            grid_spec=pltpu.PrefetchScalarGridSpec(
                num_scalar_prefetch=0,
                grid=(M // tm, N // tn),
                in_specs=[
                    pl.BlockSpec((tm, K), lambda i, j: (i, 0)),   # x: full K
                    pl.BlockSpec((K, tn), lambda i, j: (0, j)),   # w tile (bf16)
                    pl.BlockSpec((1, tn), lambda i, j: (0, j)),   # bias tile
                ],
                out_specs=pl.BlockSpec((tm, tn), lambda i, j: (i, j)),
            ),
            compiler_params=pltpu.CompilerParams(
                dimension_semantics=("parallel", "parallel"),
                vmem_limit_bytes=vmem_limit,
            ),
        )(x, w, b)

    # Split-K path (real 12k-dim layers): K-last reduction, f32 accumulator.
    assert K % tk == 0
    return pl.pallas_call(
        _linear_sigmoid_splitk_kernel,
        out_shape=jax.ShapeDtypeStruct((M, N), x.dtype),
        grid_spec=pltpu.PrefetchScalarGridSpec(
            num_scalar_prefetch=0,
            grid=(M // tm, N // tn, K // tk),
            in_specs=[
                pl.BlockSpec((tm, tk), lambda i, j, k: (i, k)),
                pl.BlockSpec((tk, tn), lambda i, j, k: (k, j)),
                pl.BlockSpec((1, tn), lambda i, j, k: (0, j)),
            ],
            out_specs=pl.BlockSpec((tm, tn), lambda i, j, k: (i, j)),
            scratch_shapes=[pltpu.VMEM((tm, tn), jnp.float32)],
        ),
        compiler_params=pltpu.CompilerParams(
            dimension_semantics=("parallel", "parallel", "arbitrary"),
            vmem_limit_bytes=vmem_limit,
        ),
    )(x, w, b)


# ---------------------------------------------------------------------------
# Autoencoder forward: encoder (2x Linear+Sigmoid) then decoder (2x)
# ---------------------------------------------------------------------------
def autoencoder_forward(x, params):
    (w1, b1), (w2, b2), (w3, b3), (w4, b4) = params
    M = x.shape[0]
    # At batch >= 128, raise tm to 128 so the MXU systolic array is filled;
    # at small batch this kernel is intentionally a weight-streaming GEMV.
    tm = M if M <= 128 else 128

    def layer(h, w, b):
        return linear_sigmoid(h, w, b, tm=tm, tn=_pick_tn(w.shape[1]))

    h = layer(x, w1, b1)            # encoder layer 1
    encoded = layer(h, w2, b2)      # encoder layer 2
    h = layer(encoded, w3, b3)      # decoder layer 1
    decoded = layer(h, w4, b4)      # decoder layer 2
    return encoded, decoded


def init_params(key, dims):
    """Deterministic synthetic init; torch-style U(-1/sqrt(fan_in), +1/sqrt(fan_in)).

    Weights are stored in bf16 (halves HBM traffic of this weight-streaming
    workload); biases stay f32."""
    params = []
    for d_in, d_out in zip(dims[:-1], dims[1:]):
        key, kw, kb = jax.random.split(key, 3)
        bound = 1.0 / jnp.sqrt(jnp.float32(d_in))
        w = jax.random.uniform(kw, (d_in, d_out), jnp.float32, -bound, bound)
        b = jax.random.uniform(kb, (1, d_out), jnp.float32, -bound, bound)
        params.append((w.astype(jnp.bfloat16), b))
    return params


def ref_forward(x, params):
    """Plain-JAX reference with the same precision policy (bf16 inputs to the
    matmul, f32 accumulation, f32 bias + sigmoid)."""
    h = x
    outs = []
    for w, b in params:
        z = jnp.dot(h.astype(jnp.bfloat16), w, preferred_element_type=jnp.float32)
        h = jax.nn.sigmoid(z + b)
        outs.append(h)
    return outs[1], outs[3]


if __name__ == "__main__":
    # Scaled-down dims mirroring 12288 -> 12000 -> 3000 -> 12000 -> 12288.
    D_IN, D_HID, D_LAT = 768, 512, 256
    BATCH = 8

    key = jax.random.PRNGKey(0)
    key, kx = jax.random.split(key)
    x = jax.random.uniform(kx, (BATCH, D_IN), jnp.float32)   # flattened "image"

    params = init_params(key, (D_IN, D_HID, D_LAT, D_HID, D_IN))

    encoded, decoded = autoencoder_forward(x, params)
    jax.block_until_ready((encoded, decoded))

    assert encoded.shape == (BATCH, D_LAT)
    assert decoded.shape == (BATCH, D_IN)

    # Correctness vs plain JAX (same bf16-weight / f32-accumulate policy).
    enc_ref, dec_ref = ref_forward(x, params)
    assert jnp.allclose(encoded, enc_ref, atol=5e-3, rtol=5e-3)
    assert jnp.allclose(decoded, dec_ref, atol=5e-3, rtol=5e-3)

    # Also exercise the split-K accumulator path (the one the real 12k-dim
    # layers would use) and check it agrees with the full-K path.
    w1, b1 = params[0]
    tn1 = _pick_tn(w1.shape[1])
    y_full = linear_sigmoid(x, w1, b1, tm=BATCH, tn=tn1)
    y_split = linear_sigmoid(x, w1, b1, tm=BATCH, tn=tn1, tk=384)
    jax.block_until_ready((y_full, y_split))
    assert jnp.allclose(y_full, y_split, atol=5e-3, rtol=5e-3)

    print("KERNEL_OK")
</pallas_src>

<mosaic_0001>
module attributes {stable_mosaic.version = 11 : i64} {
  func.func @_linear_sigmoid_fullk_kernel(%arg0: i32, %arg1: i32, %arg2: memref<8x768xf32, #tpu.memory_space<vmem>>, %arg3: memref<768x256xbf16, #tpu.memory_space<vmem>>, %arg4: memref<1x256xf32, #tpu.memory_space<vmem>>, %arg5: memref<8x256xf32, #tpu.memory_space<vmem>>) attributes {dimension_semantics = [#tpu.dimension_semantics<parallel>, #tpu.dimension_semantics<parallel>], iteration_bounds = array<i64: 1, 2>, scalar_prefetch = 0 : i64, scratch_operands = 0 : i64, tpu.core_type = #tpu.core_type<tc>, window_params = [{transform_indices = @transform_0, window_bounds = array<i64: 8, 768>}, {transform_indices = @transform_1, window_bounds = array<i64: 768, 256>}, {transform_indices = @transform_2, window_bounds = array<i64: 1, 256>}, {transform_indices = @transform_3, window_bounds = array<i64: 8, 256>}]} {
    %c0 = arith.constant 0 : index
    %c0_0 = arith.constant 0 : index
    %0 = vector.load %arg2[%c0, %c0_0] : memref<8x768xf32, #tpu.memory_space<vmem>>, vector<8x768xf32>
    %1 = arith.truncf %0 : vector<8x768xf32> to vector<8x768xbf16>
    %c0_1 = arith.constant 0 : index
    %c0_2 = arith.constant 0 : index
    %2 = vector.load %arg3[%c0_1, %c0_2] : memref<768x256xbf16, #tpu.memory_space<vmem>>, vector<768x256xbf16>
    %cst = arith.constant dense<0.000000e+00> : vector<8x256xf32>
    %3 = tpu.matmul %1, %2, %cst {dimension_numbers = #tpu.dot_dimension_numbers<[1], [0], [0], [1], [0, 0, 1, 1], [], []>} : vector<8x768xbf16>, vector<768x256xbf16>, vector<8x256xf32> -> vector<8x256xf32>
    %c0_3 = arith.constant 0 : index
    %c0_4 = arith.constant 0 : index
    %4 = vector.load %arg4[%c0_3, %c0_4] : memref<1x256xf32, #tpu.memory_space<vmem>>, vector<1x256xf32>
    %5 = vector.broadcast %4 : vector<1x256xf32> to vector<8x256xf32>
    %6 = arith.addf %3, %5 : vector<8x256xf32>
    %7 = arith.negf %6 : vector<8x256xf32>
    %8 = math.exp %7 : vector<8x256xf32>
    %cst_5 = arith.constant 1.000000e+00 : f32
    %9 = vector.broadcast %cst_5 : f32 to vector<8x256xf32>
    %10 = arith.addf %9, %8 : vector<8x256xf32>
    %11 = arith.divf %9, %10 : vector<8x256xf32>
    %c0_6 = arith.constant 0 : index
    %c0_7 = arith.constant 0 : index
    %12 = vector.load %arg5[%c0_6, %c0_7] : memref<8x256xf32, #tpu.memory_space<vmem>>, vector<8x256xf32>
    tpu.vector_store %arg5[%c0_6, %c0_7], %11 {strides = array<i32>} : memref<8x256xf32, #tpu.memory_space<vmem>>, vector<8x256xf32>,
    return
  }
  func.func @transform_0(%arg0: i32, %arg1: i32) -> (i32, i32) {
    %c0_i32 = arith.constant 0 : i32
    %c0_i32_0 = arith.constant 0 : i32
    return %arg0, %c0_i32 : i32, i32
  }
  func.func @transform_1(%arg0: i32, %arg1: i32) -> (i32, i32) {
    %c0_i32 = arith.constant 0 : i32
    %c0_i32_0 = arith.constant 0 : i32
    return %c0_i32, %arg1 : i32, i32
  }
  func.func @transform_2(%arg0: i32, %arg1: i32) -> (i32, i32) {
    %c0_i32 = arith.constant 0 : i32
    %c0_i32_0 = arith.constant 0 : i32
    return %c0_i32, %arg1 : i32, i32
  }
  func.func @transform_3(%arg0: i32, %arg1: i32) -> (i32, i32) {
    %c0_i32 = arith.constant 0 : i32
    return %arg0, %arg1 : i32, i32
  }
}

</mosaic_0001>

<bundles_post_ra>
// kernel: linear_sigmoid.1
= control target key start
LH: loop header
LB: loop body
LE: loop exit
PB: predicated region body
PF: predicated region fallthrough
CT: control target
= control target key end

     0   :  { %8 = vsyncpa [#allocation3], 0  ;;  %s1951_s0 = inlined_call_operand.hbm [shape: f32[8,768], index: 0, kind: input, shape index: {}]   ;;  %s1952_s1 = inlined_call_operand.hbm [shape: bf16[768,512], index: 1, kind: input, shape index: {}]   ;;  %s1953_s2 = inlined_call_operand.vmem [shape: f32[1,512], index: 2, kind: input, shape index: {}]   ;;  %s1954_s3 = inlined_call_operand.hbm [shape: f32[8,512], index: 3, kind: output, shape index: {}]  }
   0x1   :  { %9 = vsyncpa [#allocation6], 0 }
   0x2   :  { %11 = vsyncpa [#allocation6 + $0x1], 0 }
   0x3   :  { %12 = vsyncpa [#allocation4], 0 }
   0x4   :  { %14 = vsyncpa [#allocation4 + $0x1], 0  ;;  %s1629_s12 = smov 0   ;;  %s1631_s13 = smov 0  }
   0x5   :  { %s1633_s14 = smov 0   ;;  %s1635_s15 = smov 0  }
   0x6   :  { %s1637_s16 = smov 0   ;;  %s1639_s17 = smov 0  }
   0x7 LB: > { %s1103_s18 = sadd.s32 4294967295, %s1601_s17   ;;  %s1104_s19 = sadd.s32 4294967294, %s1601_s17   ;;  %s1601_s17 = sphi %s1639_s17, %s20_s17   ;;  %s1597_s16 = sphi %s1637_s16, %s1982_s16   ;;  %s1593_s15 = sphi %s1635_s15, %s1981_s15   ;;  %s1589_s14 = sphi %s1633_s14, %s1980_s14   ;;  %s1585_s13 = sphi %s1631_s13, %s1979_s13   ;;  %s1581_s12 = sphi %s1629_s12, %s1978_s12  }
   0x8   : > { %s65_s20 = sadd.s32 1, %s1589_s14  ;;  %p72_p0 = scmp.ne.s32.totalorder %s1589_s14, %s1585_s13 }
   0x9   : > { %p73_p1 = scmp.eq.s32.totalorder %s1601_s17, 0  ;;  %p78_p2 = scmp.ne.s32.totalorder %s1585_s13, %s1581_s12 }
   0xa   : > { %p1667_p3 = scmp.eq.s32.totalorder %s1103_s18, 0  ;;  %p130_p4 = scmp.eq.s32.totalorder %s1103_s18, 1 }
   0xb   : > { %p1671_p5 = por %p73_p1, %p72_p0  ;;  %p136_p6 = scmp.eq.s32.totalorder %s1104_s19, 1 }
   0xc   : > { %s1961_s21 = scalar_select %p1667_p3, 1, 0 }
   0xd   : > { %p1677_p7 = por %p1667_p3, %p78_p2  ;;  %p1681_p8 = por %p130_p4, %p72_p0 }
   0xe   : > { %p1685_p9 = por %p136_p6, %p78_p2  ;;  %p1105_p10 = scmp.ge.s32.totalorder %s1601_s17, 1 }
   0xf   : > { %s1963_s23 = scalar_select %p1677_p7, 1, 0 }
  0x10   : > { %s1964_s24 = scalar_select %p1681_p8, 1, 0 }
  0x11   : > { %s1965_s25 = scalar_select %p1685_p9, 1, 0 }
  0x12   : > { %p143_p11 = scmp.lt.s32.totalorder %s1601_s17, 3  ;;  %s1603_s27 = smov [#allocation2]  }
  0x13   : > { %s159_s28 = sshll.u32 %s1603_s27, 4  ;;  %p1250_p1 = scmp.lt.s32.totalorder %s1601_s17, 2  ;;  %s160_s28 = int_to_ptr.vmem [resolvable:$true] %s159_s28 }
  0x14   : > { %p1692_p13 = pnand %p1105_p10, %p143_p11  ;;  %s29_s4 = sadd.s32 1, %s1597_s16 }
  0x15   : > { %p1701_p4 = pnand %p1250_p1, %p1671_p5  ;;  %p1712_p6 = scmp.ge.s32.totalorder %s29_s4, 2 }
  0x16   : > { %s1966_s26 = scalar_select %p1692_p13, 1, 0 }
  0x17   : > { %p1237_p0 = pneg %p1692_p13  ;;  %s170_s6 = sand.u32 1, %s1589_s14  }
  0x18   : > { %s1967_s29 = scalar_select %p1701_p4, 1, 0 }
  0x19   : > { %p1707_p2 = pnand %p1237_p0, %p1667_p3  ;;  %s1457_s9 = scalar_lea.hbm %s1951_s0, 768 }
  0x1a   : > { %s1969_s5 = scalar_select %p1712_p6, 1, 0 }
  0x1b   : > { %p1458_p5 = scmp.ne.s32.totalorder %s1951_s0, %s1457_s9  ;;  %p1459_p10 = pneg %p1707_p2 }
  0x1c   : > { %p1464_p0 = scmp.lt.u32.totalorder %s1457_s9, %s1951_s0 }
  0x1d   : > { %p1460_p11 = pnand %p1459_p10, %p1458_p5 }
  0x1f   : > { %p1461_p1 = pneg %p1460_p11 }
  0x21   : > { %p1466_p12 = pnand %p1464_p0, %p1461_p1 }
  0x23   : > { %1469 = shalt.err (!%p1466_p12)
}
  0x24   : > { %s1470_s22 = scalar_lea.vmem %s160_s28, 768  ;;  %p1478_p3 = scmp.lt.s32.totalorder %s160_s28, %s160_s28 }
  0x25   : > { %p1471_p9 = scmp.ne.s32.totalorder %s160_s28, %s1470_s22  ;;  %p1479_p13 = scmp.lt.s32.totalorder %s1470_s22, %s1470_s22 }
  0x27   : > { %p1473_p8 = pnand %p1471_p9, %p1459_p10  ;;  %p1480_p4 = por %p1479_p13, %p1478_p3 }
  0x29   : > { %p1474_p7 = pneg %p1473_p8 }
  0x2b   : > { %p1481_p6 = pnand %p1480_p4, %p1474_p7 }
  0x2d   : > { %1484 = shalt.err (!%p1481_p6)
}
  0x2e   : > { %1240 = dma.hbm_to_vmem [thread:$0]  (!%p1707_p2), %s1951_s0, 768, %s160_s28, [#allocation3]  }
  0x2f   : > { %p1970_p9 = scmp.ne.s32.totalorder %s1969_s5, 0  ;;  %s1227_s8 = smul.u32 768, %s170_s6 }
  0x30   : > { %s1217_s10 = sshll.u32 %s1597_s16, 7  ;;  %s1752_s5 = scalar_lea.sflag [#allocation6], %s170_s6 }
  0x31   : > { %s1984_s4 = smov (%p1970_p9, %s29_s4), 0  ;;  %s1743_s18 = scalar_lea.hbm %s1952_s1, %s1217_s10 }
  0x32   : > { %s62_s9 = ssub.s32 %s1597_s16, %s1984_s4  ;;  %s174_s19 = scalar_lea.vmem [#allocation5], %s1227_s8 }
  0x33   : > { %p63_p3 = scmp.eq.s32.totalorder %s62_s9, 0  ;;  %s181_s22 = sshll.u32 %s174_s19, 4  ;;  %s1750_s22 = int_to_ptr.vmem [resolvable:$true] %s181_s22 }
  0x34   : > { %s1485_s27 = scalar_lea.hbm %s1743_s18, 12288  ;;  %p1971_p8 = scmp.ne.s32.totalorder %s1967_s29, 0 }
  0x35   : > { %s1748_s28 = scalar_select %p63_p3, %s1589_s14, %s65_s20  }
  0x36   : > { %p1486_p7 = scmp.ne.s32.totalorder %s1743_s18, %s1485_s27  ;;  %p1487_p12 = pneg %p1971_p8 }
  0x37   : > { %s1490_s8 = scalar_lea.hbm %s1952_s1, 24576  ;;  %p1491_p2 = scmp.lt.u32.totalorder %s1743_s18, %s1952_s1 }
  0x38   : > { %p1488_p13 = pnand %p1487_p12, %p1486_p7  ;;  %p1492_p6 = scmp.lt.u32.totalorder %s1490_s8, %s1485_s27 }
  0x39   : > { %p1494_p10 = scmp.lt.u32.totalorder %s1485_s27, %s1743_s18 }
  0x3a   : > { %p1489_p4 = pneg %p1488_p13  ;;  %p1493_p5 = por %p1492_p6, %p1491_p2 }
  0x3c   : > { %p1495_p11 = por %p1494_p10, %p1493_p5 }
  0x3e   : > { %p1496_p1 = pnand %p1495_p11, %p1489_p4 }
  0x40   : > { %1499 = shalt.err (!%p1496_p1)
}
  0x41   : > { %s1500_s20 = scalar_lea.vmem %s1750_s22, 12288  ;;  %s1604_s6 = smov [#allocation5]  }
  0x42   : > { %p1501_p0 = scmp.ne.s32.totalorder %s1750_s22, %s1500_s20  ;;  %s1505_s11 = sshll.u32 %s1604_s6, 4  ;;  %s1506_s11 = int_to_ptr.vmem [resolvable:$false] %s1505_s11 }
  0x43   : > { %s1507_s19 = scalar_lea.vmem %s1506_s11, 24576  ;;  %p1508_p7 = scmp.lt.s32.totalorder %s1750_s22, %s1506_s11 }
  0x44   : > { %p1503_p9 = pnand %p1501_p0, %p1487_p12  ;;  %p1509_p13 = scmp.lt.s32.totalorder %s1507_s19, %s1500_s20 }
  0x46   : > { %p1504_p3 = pneg %p1503_p9  ;;  %p1510_p2 = por %p1509_p13, %p1508_p7 }
  0x48   : > { %p1511_p6 = pnand %p1510_p2, %p1504_p3 }
  0x4a   : > { %1514 = shalt.err (!%p1511_p6)
}
  0x4b   : > { %s1605_s27 = smov 256   ;;  %s1606_s7 = smov 128  }
  0x4c   : > { %s1607_s9 = smov 8   ;;  %p1972_p12 = scmp.ne.s32.totalorder %s1966_s26, 0 }
  0x4d   : > { %1244 = dma.hbm_to_vmem [thread:$0]  (!%p1971_p8), %s1743_s18, 12288, %s1750_s22, %s1752_s5, %s1605_s27, %s1606_s7, %s1607_s9  }
  0x4e   : > { %201 = sbr.rel (%p1972_p12) target bundleno = 475 (0x1db), region = 32  ;;  %p1973_p4 = scmp.ne.s32.totalorder (!%p1972_p12), %s1961_s21, 0 }
  0x55   : > { %1568 = dma.done.wait (%p1973_p4), [#allocation3], 768  }
  0x56   : > { %1570 = vsyncadd (%p1973_p4), [#allocation3], 4294966528  ;;  %s1787_s8 = sand.u32 1, %s1585_s13   ;;  %p1974_p8 = scmp.ne.s32.totalorder %s1963_s23, 0 }
  0x57   : > { %s1228_s10 = smul.u32 768, %s1787_s8  ;;  %s208_s30 = scalar_lea.sflag [#allocation6], %s1787_s8 }
  0x59   : > { %s1791_s20 = scalar_lea.vmem [#allocation5], %s1228_s10 }
  0x5a   : > { %1572 = dma.done.wait (%p1974_p8), %s208_s30, 12288  }
  0x5b   : > { %1574 = vsyncadd (%p1974_p8), %s208_s30, 4294955008  ;;  %v1305_v0 = vld [vmem:[%s1791_s20 + $0x104] ss:$8 sps:$4 sm:$0xff]   ;;  %v1307_v1 = vld [vmem:[%s1791_s20 + $0x100] ss:$8 sps:$4 sm:$0xff]   ;;  %s1113_s21 = sshll.u32 %s1593_s15, 1 }
  0x5c   : > { %886 = vmatprep.subr.bf16.mxu0 %v1305_v0  ;;  %v1308_v2 = vld [vmem:[%s1791_s20 + $0x114] ss:$8 sps:$4 sm:$0xff]   ;;  %v1310_v3 = vld [vmem:[%s1791_s20 + $0x110] ss:$8 sps:$4 sm:$0xff]   ;;  %v1311_v4 = vld [vmem:[%s1791_s20 + $0x124] ss:$8 sps:$4 sm:$0xff]  }
  0x5d   : > { %887 = vmatpush1.bf16.msra.mxu0 %v1307_v1  ;;  %v1313_v5 = vld [vmem:[%s1791_s20 + $0x120] ss:$8 sps:$4 sm:$0xff]   ;;  %v1314_v6 = vld [vmem:[%s1791_s20 + $0x134] ss:$8 sps:$4 sm:$0xff]   ;;  %v1316_v7 = vld [vmem:[%s1791_s20 + $0x130] ss:$8 sps:$4 sm:$0xff]  }
  0x5e   : > { %888 = vmatprep.subr.bf16.mxu0 %v1308_v2  ;;  %v1317_v8 = vld [vmem:[%s1791_s20 + $0x144] ss:$8 sps:$4 sm:$0xff]   ;;  %v1319_v9 = vld [vmem:[%s1791_s20 + $0x140] ss:$8 sps:$4 sm:$0xff]   ;;  %v1320_v10 = vld [vmem:[%s1791_s20 + $0x154] ss:$8 sps:$4 sm:$0xff]  }
  0x5f   : > { %v1322_v11 = vld [vmem:[%s1791_s20 + $0x150] ss:$8 sps:$4 sm:$0xff]   ;;  %v1323_v12 = vld [vmem:[%s1791_s20 + $0x164] ss:$8 sps:$4 sm:$0xff]   ;;  %v1352_v14 = vld [vmem:[%s1791_s20] ss:$8 sps:$4 sm:$0xff]  }
  0x60   : > { %v1350_v13 = vld [vmem:[%s1791_s20 + $0x4] ss:$8 sps:$4 sm:$0xff]   ;;  %v1325_v15 = vld [vmem:[%s1791_s20 + $0x160] ss:$8 sps:$4 sm:$0xff]   ;;  %v1326_v16 = vld [vmem:[%s1791_s20 + $0x174] ss:$8 sps:$4 sm:$0xff]  }
  0x61   : > { %889 = vmatpush1.bf16.msra.mxu0 %v1310_v3  ;;  %845 = vmatprep.subr.bf16.mxu1 %v1350_v13  ;;  %v1356_v17 = vld [vmem:[%s1791_s20 + $0x14] ss:$8 sps:$4 sm:$0xff]   ;;  %v1358_v18 = vld [vmem:[%s1791_s20 + $0x10] ss:$8 sps:$4 sm:$0xff]   ;;  %v248_v19 = vld [vmem:[#allocation2 + $0x18] sm:$0xff]  ;;  %p240_p5 = scmp.lt.s32.totalorder %s1113_s21, 3 }
  0x62   : > { %890 = vmatprep.subr.bf16.mxu0 %v1311_v4  ;;  %846 = vmatpush1.bf16.msra.mxu1 %v1352_v14  ;;  %v1328_v20 = vld [vmem:[%s1791_s20 + $0x170] ss:$8 sps:$4 sm:$0xff]   ;;  %v254_v21 = vpack.c.bf16 %v248_v19, %v248_v19  ;;  %v1362_v22 = vld [vmem:[%s1791_s20 + $0x24] ss:$8 sps:$4 sm:$0xff]   ;;  %v1364_v23 = vld [vmem:[%s1791_s20 + $0x20] ss:$8 sps:$4 sm:$0xff]  }
  0x63   : > { %847 = vmatprep.subr.bf16.mxu1 %v1356_v17  ;;  %v1329_v24 = vld [vmem:[%s1791_s20 + $0x184] ss:$8 sps:$4 sm:$0xff]   ;;  %v1368_v25 = vld [vmem:[%s1791_s20 + $0x34] ss:$8 sps:$4 sm:$0xff]   ;;  %v1331_v26 = vld [vmem:[%s1791_s20 + $0x180] ss:$8 sps:$4 sm:$0xff]  }
  0x64   : > { %918 = vmatprep.mubr.bf16.mxu0 %v254_v21  ;;  %v1370_v27 = vld [vmem:[%s1791_s20 + $0x30] ss:$8 sps:$4 sm:$0xff]   ;;  %v1332_v28 = vld [vmem:[%s1791_s20 + $0x194] ss:$8 sps:$4 sm:$0xff]   ;;  %v1374_v29 = vld [vmem:[%s1791_s20 + $0x44] ss:$8 sps:$4 sm:$0xff]  }
  0x65   : > { %891 = vmatpush1.bf16.msra.mxu0 %v1313_v5  ;;  %v1334_v30 = vld [vmem:[%s1791_s20 + $0x190] ss:$8 sps:$4 sm:$0xff]   ;;  %v1376_v31 = vld [vmem:[%s1791_s20 + $0x40] ss:$8 sps:$4 sm:$0xff]   ;;  %v1335_v32 = vld [vmem:[%s1791_s20 + $0x1a4] ss:$8 sps:$4 sm:$0xff]  }
  0x66   : > { %892 = vmatprep.subr.bf16.mxu0 %v1314_v6  ;;  %848 = vmatpush1.bf16.msra.mxu1 %v1358_v18  ;;  %v1380_v33 = vld [vmem:[%s1791_s20 + $0x54] ss:$8 sps:$4 sm:$0xff]   ;;  %v1337_v34 = vld [vmem:[%s1791_s20 + $0x1a0] ss:$8 sps:$4 sm:$0xff]   ;;  %v1382_v35 = vld [vmem:[%s1791_s20 + $0x50] ss:$8 sps:$4 sm:$0xff]  }
  0x67   : > { %849 = vmatprep.subr.bf16.mxu1 %v1362_v22  ;;  %v1338_v36 = vld [vmem:[%s1791_s20 + $0x1b4] ss:$8 sps:$4 sm:$0xff]   ;;  %v1386_v37 = vld [vmem:[%s1791_s20 + $0x64] ss:$8 sps:$4 sm:$0xff]   ;;  %v1340_v38 = vld [vmem:[%s1791_s20 + $0x1b0] ss:$8 sps:$4 sm:$0xff]  }
  0x68   : > { %v1388_v39 = vld [vmem:[%s1791_s20 + $0x60] ss:$8 sps:$4 sm:$0xff]   ;;  %v1341_v40 = vld [vmem:[%s1791_s20 + $0x1c4] ss:$8 sps:$4 sm:$0xff]   ;;  %v1392_v41 = vld [vmem:[%s1791_s20 + $0x74] ss:$8 sps:$4 sm:$0xff]  }
  0x69   : > { %893 = vmatpush1.bf16.msra.mxu0 %v1316_v7  ;;  %v1343_v42 = vld [vmem:[%s1791_s20 + $0x1c0] ss:$8 sps:$4 sm:$0xff]   ;;  %v1394_v43 = vld [vmem:[%s1791_s20 + $0x70] ss:$8 sps:$4 sm:$0xff]   ;;  %v1344_v44 = vld [vmem:[%s1791_s20 + $0x1d4] ss:$8 sps:$4 sm:$0xff]  }
  0x6a   : > { %894 = vmatprep.subr.bf16.mxu0 %v1317_v8  ;;  %850 = vmatpush1.bf16.msra.mxu1 %v1364_v23  ;;  %v1398_v45 = vld [vmem:[%s1791_s20 + $0x84] ss:$8 sps:$4 sm:$0xff]   ;;  %v1346_v46 = vld [vmem:[%s1791_s20 + $0x1d0] ss:$8 sps:$4 sm:$0xff]   ;;  %v1400_v47 = vld [vmem:[%s1791_s20 + $0x80] ss:$8 sps:$4 sm:$0xff]  }
  0x6b   : > { %851 = vmatprep.subr.bf16.mxu1 %v1368_v25  ;;  %v1347_v48 = vld [vmem:[%s1791_s20 + $0x1e4] ss:$8 sps:$4 sm:$0xff]   ;;  %v1404_v49 = vld [vmem:[%s1791_s20 + $0x94] ss:$8 sps:$4 sm:$0xff]   ;;  %v1349_v50 = vld [vmem:[%s1791_s20 + $0x1e0] ss:$8 sps:$4 sm:$0xff]  }
  0x6c   : > { %v1406_v51 = vld [vmem:[%s1791_s20 + $0x90] ss:$8 sps:$4 sm:$0xff]   ;;  %v1353_v52 = vld [vmem:[%s1791_s20 + $0x1f4] ss:$8 sps:$4 sm:$0xff]   ;;  %v1410_v53 = vld [vmem:[%s1791_s20 + $0xa4] ss:$8 sps:$4 sm:$0xff]  }
  0x6d   : > { %895 = vmatpush1.bf16.msra.mxu0 %v1319_v9  ;;  %v1355_v54 = vld [vmem:[%s1791_s20 + $0x1f0] ss:$8 sps:$4 sm:$0xff]   ;;  %v247_v55 = vld [vmem:[#allocation2 + $0x10] sm:$0xff]  ;;  %v1416_v58 = vld [vmem:[%s1791_s20 + $0xb4] ss:$8 sps:$4 sm:$0xff]   ;;  %s1986_s21 = smov (!%p240_p5, %s1113_s21), 3 }
  0x6e   : > { %896 = vmatprep.subr.bf16.mxu0 %v1320_v10  ;;  %852 = vmatpush1.bf16.msra.mxu1 %v1370_v27  ;;  %v1412_v56 = vld [vmem:[%s1791_s20 + $0xa0] ss:$8 sps:$4 sm:$0xff]   ;;  %v1361_v57 = vld [vmem:[%s1791_s20 + $0x204] ss:$8 sps:$4 sm:$0xff]   ;;  %v253_v60 = vpack.c.bf16 %v247_v55, %v247_v55  ;;  %v1367_v61 = vld [vmem:[%s1791_s20 + $0x214] ss:$8 sps:$4 sm:$0xff]   ;;  %s242_s29 = scalar_lea.vmem %s1953_s2, %s1986_s21 }
  0x6f   : > { %853 = vmatprep.subr.bf16.mxu1 %v1374_v29  ;;  %v1359_v59 = vld [vmem:[%s1791_s20 + $0x200] ss:$8 sps:$4 sm:$0xff]   ;;  %v1418_v62 = vld [vmem:[%s1791_s20 + $0xb0] ss:$8 sps:$4 sm:$0xff]   ;;  %v1422_v0 = vld [vmem:[%s1791_s20 + $0xc4] ss:$8 sps:$4 sm:$0xff]  }
  0x70   : > { %v246_v63 = vld [vmem:[#allocation2 + $0x8] sm:$0xff]  ;;  %v1424_v5 = vld [vmem:[%s1791_s20 + $0xc0] ss:$8 sps:$4 sm:$0xff]   ;;  %v1373_v6 = vld [vmem:[%s1791_s20 + $0x224] ss:$8 sps:$4 sm:$0xff]   ;;  %s1112_s18 = sshll.u32 %s1787_s8, 4 }
  0x71   : > { %897 = vmatpush1.bf16.msra.mxu0 %v1322_v11  ;;  %v252_v1 = vpack.c.bf16 %v246_v63, %v246_v63  ;;  %v250_v2 = vld [vmem:[#allocation2 + $0x28] sm:$0xff]  ;;  %v1371_v8 = vld [vmem:[%s1791_s20 + $0x220] ss:$8 sps:$4 sm:$0xff]   ;;  %v1434_v11 = vld [vmem:[%s1791_s20 + $0xe4] ss:$8 sps:$4 sm:$0xff]   ;;  %s1218_s22 = sshll.u32 %s1593_s15, 8 }
  0x72   : > { %898 = vmatprep.subr.bf16.mxu0 %v1323_v12  ;;  %854 = vmatpush1.bf16.msra.mxu1 %v1376_v31  ;;  %v256_v3 = vpack.c.bf16 %v250_v2, %v250_v2  ;;  %v1365_v4 = vld [vmem:[%s1791_s20 + $0x210] ss:$8 sps:$4 sm:$0xff]   ;;  %v1428_v7 = vld [vmem:[%s1791_s20 + $0xd4] ss:$8 sps:$4 sm:$0xff]   ;;  %v1436_v13 = vld [vmem:[%s1791_s20 + $0xe0] ss:$8 sps:$4 sm:$0xff]   ;;  %s1902_s27 = scalar_lea.hbm %s1954_s3, %s1218_s22 }
  0x73   : > { %855 = vmatprep.subr.bf16.mxu1 %v1380_v33  ;;  %877 = vmatprep.mubr.bf16.mxu1 %v252_v1  ;;  %v1430_v9 = vld [vmem:[%s1791_s20 + $0xd0] ss:$8 sps:$4 sm:$0xff]   ;;  %v1379_v10 = vld [vmem:[%s1791_s20 + $0x234] ss:$8 sps:$4 sm:$0xff]   ;;  %v1385_v14 = vld [vmem:[%s1791_s20 + $0x244] ss:$8 sps:$4 sm:$0xff]  }
  0x74   : > { %v1377_v12 = vld [vmem:[%s1791_s20 + $0x230] ss:$8 sps:$4 sm:$0xff]   ;;  %v1391_v19 = vld [vmem:[%s1791_s20 + $0x254] ss:$8 sps:$4 sm:$0xff]   ;;  %v1397_v22 = vld [vmem:[%s1791_s20 + $0x264] ss:$8 sps:$4 sm:$0xff]  }
  0x75   : > { %899 = vmatpush1.bf16.msra.mxu0 %v1325_v15  ;;  %v1440_v15 = vld [vmem:[%s1791_s20 + $0xf4] ss:$8 sps:$4 sm:$0xff]   ;;  %v1442_v17 = vld [vmem:[%s1791_s20 + $0xf0] ss:$8 sps:$4 sm:$0xff]   ;;  %v1395_v23 = vld [vmem:[%s1791_s20 + $0x260] ss:$8 sps:$4 sm:$0xff]  }
  0x76   : > { %900 = vmatprep.subr.bf16.mxu0 %v1326_v16  ;;  %856 = vmatpush1.bf16.msra.mxu1 %v1382_v35  ;;  %v1383_v16 = vld [vmem:[%s1791_s20 + $0x240] ss:$8 sps:$4 sm:$0xff]   ;;  %v245_v18 = vld [vmem:[#allocation2] sm:$0xff]  ;;  %s237_s5 = scalar_lea.vmem [#allocation7], %s1112_s18  ;;  %s983_s7 = scalar_lea.sflag [#allocation4], %s1787_s8 }
  0x77   : > { %857 = vmatprep.subr.bf16.mxu1 %v1386_v37  ;;  %v1389_v21 = vld [vmem:[%s1791_s20 + $0x250] ss:$8 sps:$4 sm:$0xff]   ;;  %v1407_v27 = vld [vmem:[%s1791_s20 + $0x280] ss:$8 sps:$4 sm:$0xff]   ;;  %s999_s6 = sshll.u32 %s237_s5, 4  ;;  %p1975_p11 = scmp.ne.s32.totalorder %s1964_s24, 0  ;;  %s1904_s6 = int_to_ptr.vmem [resolvable:$true] %s999_s6 }
  0x78   : > { %v1401_v25 = vld [vmem:[%s1791_s20 + $0x270] ss:$8 sps:$4 sm:$0xff]   ;;  %v1419_v31 = vld [vmem:[%s1791_s20 + $0x2a0] ss:$8 sps:$4 sm:$0xff]   ;;  %s1515_s9 = scalar_lea.vmem %s1904_s6, 256  ;;  %s1608_s15 = smov [#allocation7]  }
  0x79   : > { %901 = vmatpush1.bf16.msra.mxu0 %v1328_v20  ;;  %v251_v20 = vpack.c.bf16 %v245_v18, %v245_v18  ;;  %v1413_v29 = vld [vmem:[%s1791_s20 + $0x290] ss:$8 sps:$4 sm:$0xff]   ;;  %v1431_v35 = vld [vmem:[%s1791_s20 + $0x2c0] ss:$8 sps:$4 sm:$0xff]   ;;  %p1516_p10 = scmp.ne.s32.totalorder %s1904_s6, %s1515_s9  ;;  %s1519_s10 = sshll.u32 %s1608_s15, 4  ;;  %s1520_s10 = int_to_ptr.vmem [resolvable:$false] %s1519_s10 }
  0x7a   : > { %902 = vmatprep.subr.bf16.mxu0 %v1329_v24  ;;  %858 = vmatpush1.bf16.msra.mxu1 %v1388_v39  ;;  %v1403_v24 = vld [vmem:[%s1791_s20 + $0x274] ss:$8 sps:$4 sm:$0xff]   ;;  %v1425_v33 = vld [vmem:[%s1791_s20 + $0x2b0] ss:$8 sps:$4 sm:$0xff]   ;;  %v1443_v39 = vld [vmem:[%s1791_s20 + $0x2e0] ss:$8 sps:$4 sm:$0xff]   ;;  %p1522_p9 = scmp.lt.s32.totalorder %s1904_s6, %s1520_s10 }
  0x7b   : > { %859 = vmatprep.subr.bf16.mxu1 %v1392_v41  ;;  %v1437_v37 = vld [vmem:[%s1791_s20 + $0x2d0] ss:$8 sps:$4 sm:$0xff]   ;;  %p1517_p1 = pnand %p1516_p10, %p1975_p11  ;;  %s1521_s30 = scalar_lea.vmem %s1520_s10, 512 }
  0x7c   : > { %v1446_v41 = vld [vmem:[%s1791_s20 + $0x2f0] ss:$8 sps:$4 sm:$0xff]   ;;  %p1523_p3 = scmp.lt.s32.totalorder %s1521_s30, %s1515_s9 }
  0x7d   : > { %903 = vmatpush1.bf16.msra.mxu0 %v1331_v26  ;;  %v1409_v26 = vld [vmem:[%s1791_s20 + $0x284] ss:$8 sps:$4 sm:$0xff]   ;;  %p1518_p0 = pneg %p1517_p1 }
  0x7e   : > { %904 = vmatprep.subr.bf16.mxu0 %v1332_v28  ;;  %860 = vmatpush1.bf16.msra.mxu1 %v1394_v43  ;;  %v1415_v28 = vld [vmem:[%s1791_s20 + $0x294] ss:$8 sps:$4 sm:$0xff]   ;;  %p1524_p7 = por %p1523_p3, %p1522_p9 }
  0x7f   : > { %861 = vmatprep.subr.bf16.mxu1 %v1398_v45 }
  0x80   : > { %p1525_p13 = pnand %p1524_p7, %p1518_p0 }
  0x81   : > { %905 = vmatpush1.bf16.msra.mxu0 %v1334_v30  ;;  %v1421_v30 = vld [vmem:[%s1791_s20 + $0x2a4] ss:$8 sps:$4 sm:$0xff]  }
  0x82   : > { %906 = vmatprep.subr.bf16.mxu0 %v1335_v32  ;;  %862 = vmatpush1.bf16.msra.mxu1 %v1400_v47  ;;  %v1427_v32 = vld [vmem:[%s1791_s20 + $0x2b4] ss:$8 sps:$4 sm:$0xff]  }
  0x83   : > { %863 = vmatprep.subr.bf16.mxu1 %v1404_v49 }
  0x85   : > { %907 = vmatpush1.bf16.msra.mxu0 %v1337_v34  ;;  %v1433_v34 = vld [vmem:[%s1791_s20 + $0x2c4] ss:$8 sps:$4 sm:$0xff]  }
  0x86   : > { %908 = vmatprep.subr.bf16.mxu0 %v1338_v36  ;;  %864 = vmatpush1.bf16.msra.mxu1 %v1406_v51  ;;  %v1439_v36 = vld [vmem:[%s1791_s20 + $0x2d4] ss:$8 sps:$4 sm:$0xff]   ;;  %v353_v51 = vld [vmem:[%s242_s29] sm:$0x3] }
  0x87   : > { %865 = vmatprep.subr.bf16.mxu1 %v1410_v53 }
  0x89   : > { %909 = vmatpush1.bf16.msra.mxu0 %v1340_v38  ;;  %v1445_v38 = vld [vmem:[%s1791_s20 + $0x2e4] ss:$8 sps:$4 sm:$0xff]  }
  0x8a   : > { %910 = vmatprep.subr.bf16.mxu0 %v1341_v40  ;;  %866 = vmatpush1.bf16.msra.mxu1 %v1412_v56  ;;  %v1448_v40 = vld [vmem:[%s1791_s20 + $0x2f4] ss:$8 sps:$4 sm:$0xff]  }
  0x8b   : > { %867 = vmatprep.subr.bf16.mxu1 %v1416_v58 }
  0x8d   : > { %911 = vmatpush1.bf16.msra.mxu0 %v1343_v42  ;;  %v249_v42 = vld [vmem:[#allocation2 + $0x20] sm:$0xff] }
  0x8e   : > { %912 = vmatprep.subr.bf16.mxu0 %v1344_v44  ;;  %868 = vmatpush1.bf16.msra.mxu1 %v1418_v62  ;;  %v255_v43 = vpack.c.bf16 %v249_v42, %v249_v42 }
  0x8f   : > { %869 = vmatprep.subr.bf16.mxu1 %v1422_v0 }
  0x91   : > { %913 = vmatpush1.bf16.msra.mxu0 %v1346_v46 }
  0x92   : > { %914 = vmatprep.subr.bf16.mxu0 %v1347_v48  ;;  %870 = vmatpush1.bf16.msra.mxu1 %v1424_v5  ;;  %v355_v48 = vlaneseq }
  0x93   : > { %871 = vmatprep.subr.bf16.mxu1 %v1428_v7 }
  0x94   : > { %v356_v49 = vshrl.u32 %v355_v48, 7 }
  0x95   : > { %915 = vmatpush1.bf16.msra.mxu0 %v1349_v50 }
  0x96   : > { %916 = vmatprep.subr.bf16.mxu0 %v1353_v52  ;;  %872 = vmatpush1.bf16.msra.mxu1 %v1430_v9  ;;  %v357_v50 = vsub.s32 0, %v356_v49  ;;  %v361_v52 = vsub.s32 1, %v356_v49 }
  0x97   : > { %873 = vmatprep.subr.bf16.mxu1 %v1434_v11 }
  0x98   : > { %v358_v53 = vrot.slane %v353_v51, %v357_v50 }
  0x99   : > { %917 = vmatpush1.bf16.msra.mxu0 %v1355_v54  ;;  %v362_v54 = vrot.slane %v353_v51, %v361_v52 }
  0x9a   : > { %927 = vmatprep.subr.bf16.mxu0 %v1361_v57  ;;  %874 = vmatpush1.bf16.msra.mxu1 %v1436_v13 }
  0x9b   : > { %875 = vmatprep.subr.bf16.mxu1 %v1440_v15 }
  0x9c   : > { %919 = vmatmul.mubr.bf16.vlgmr.msra.gmra.mrb[0].mxu0 %v253_v60 }
  0x9d   : > { %928 = vmatpush1.bf16.msra.mxu0 %v1359_v59  ;;  %959 = vmatprep.mubr.bf16.mxu0 %v256_v3 }
  0x9e   : > { %929 = vmatprep.subr.bf16.mxu0 %v1367_v61  ;;  %876 = vmatpush1.bf16.msra.mxu1 %v1442_v17 }
  0xa1   : > { %930 = vmatpush1.bf16.msra.mxu0 %v1365_v4  ;;  %878 = vmatmul.mubr.bf16.vlgmr.msra.gmra.mrb[0].mxu1 %v251_v20 }
  0xa2   : > { %931 = vmatprep.subr.bf16.mxu0 %v1373_v6 }
  0xa5   : > { %932 = vmatpush1.bf16.msra.mxu0 %v1371_v8 }
  0xa6   : > { %933 = vmatprep.subr.bf16.mxu0 %v1379_v10 }
  0xa9   : > { %934 = vmatpush1.bf16.msra.mxu0 %v1377_v12 }
  0xaa   : > { %935 = vmatprep.subr.bf16.mxu0 %v1385_v14 }
  0xad   : > { %936 = vmatpush1.bf16.msra.mxu0 %v1383_v16 }
  0xae   : > { %937 = vmatprep.subr.bf16.mxu0 %v1391_v19 }
  0xb1   : > { %938 = vmatpush1.bf16.msra.mxu0 %v1389_v21 }
  0xb2   : > { %939 = vmatprep.subr.bf16.mxu0 %v1397_v22 }
  0xb5   : > { %940 = vmatpush1.bf16.msra.mxu0 %v1395_v23 }
  0xb6   : > { %941 = vmatprep.subr.bf16.mxu0 %v1403_v24 }
  0xb9   : > { %942 = vmatpush1.bf16.msra.mxu0 %v1401_v25 }
  0xba   : > { %943 = vmatprep.subr.bf16.mxu0 %v1409_v26 }
  0xbd   : > { %944 = vmatpush1.bf16.msra.mxu0 %v1407_v27 }
  0xbe   : > { %945 = vmatprep.subr.bf16.mxu0 %v1415_v28 }
  0xc1   : > { %946 = vmatpush1.bf16.msra.mxu0 %v1413_v29 }
  0xc2   : > { %947 = vmatprep.subr.bf16.mxu0 %v1421_v30 }
  0xc5   : > { %948 = vmatpush1.bf16.msra.mxu0 %v1419_v31 }
  0xc6   : > { %949 = vmatprep.subr.bf16.mxu0 %v1427_v32 }
  0xc9   : > { %950 = vmatpush1.bf16.msra.mxu0 %v1425_v33 }
  0xca   : > { %951 = vmatprep.subr.bf16.mxu0 %v1433_v34 }
  0xcd   : > { %952 = vmatpush1.bf16.msra.mxu0 %v1431_v35 }
  0xce   : > { %953 = vmatprep.subr.bf16.mxu0 %v1439_v36 }
  0xd1   : > { %954 = vmatpush1.bf16.msra.mxu0 %v1437_v37 }
  0xd2   : > { %955 = vmatprep.subr.bf16.mxu0 %v1445_v38 }
  0xd5   : > { %956 = vmatpush1.bf16.msra.mxu0 %v1443_v39 }
  0xd6   : > { %957 = vmatprep.subr.bf16.mxu0 %v1448_v40 }
  0xd9   : > { %958 = vmatpush1.bf16.msra.mxu0 %v1446_v41 }
  0xdc   : > { %960 = vmatmul.mubr.bf16.vlgmr.msra.gmra.mrb[0].mxu0 %v255_v43 }
 0x174   : > { %v879_v44 = vpop.f32.mrb[0].mxu1 }
 0x175   : > { %v881_v45 = vpop.f32.mrb[1].mxu1  ;;  %v880_v55 = vadd.f32 %v879_v44, %v358_v53 }
 0x176   : > { %v883_v46 = vpop.f32.mrb[2].mxu1  ;;  %v882_v56 = vadd.f32 %v881_v45, %v362_v54 }
 0x177   : > { %v884_v47 = vpop.f32.mrb[3].mxu1 }
 0x1af   : > { %v961_v57 = vpop.f32.mrb[0].mxu0 }
 0x1b0   : > { %v1220_v58 = vadd.f32 %v961_v57, %v880_v55  ;;  %v963_v59 = vpop.f32.mrb[1].mxu0 }
 0x1b1   : > { %v1222_v60 = vadd.f32 %v963_v59, %v882_v56  ;;  %v965_v61 = vpop.f32.mrb[2].mxu0 }
 0x1b2   : > { %v1210_v62 = vmul.f32 -1.442695, %v1220_v58  ;;  %v966_v63 = vpop.f32.mrb[3].mxu0 }
 0x1b3   : > { %v1211_v0 = vmul.f32 -1.442695, %v1222_v60 }
 0x1b4   : > { %1449 = vpow2.f32 %v1210_v62 }
 0x1b5   : > { %1451 = vpow2.f32 %v1211_v0 }
 0x1be   : > { %v1450_v1 = vpop.eup %1449 }
 0x1bf   : > { %v1452_v2 = vpop.eup %1451  ;;  %v974_v3 = vadd.f32 1.0, %v1450_v1 }
 0x1c0   : > { %v975_v4 = vadd.f32 1.0, %v1452_v2 }
 0x1c1   : > { %1453 = vrcp.f32 %v974_v3 }
 0x1c2   : > { %1455 = vrcp.f32 %v975_v4 }
 0x1cb   : > { %v1454_v5 = vpop.eup %1453 }
 0x1cc   : > { %v1456_v6 = vpop.eup %1455  ;;  %980 = vst [vmem:[%s237_s5] sm:$0xff] %v1454_v5 }
 0x1cd   : > { %981 = vst [vmem:[%s237_s5 + $0x8] sm:$0xff] %v1456_v6 }
 0x1ce   : > { %1528 = shalt.err (!%p1525_p13)
}
 0x1cf   : > { %s1529_s8 = scalar_lea.hbm %s1902_s27, 256  ;;  %s1533_s23 = scalar_lea.hbm %s1954_s3, 512 }
 0x1d0   : > { %p1530_p2 = scmp.ne.s32.totalorder %s1902_s27, %s1529_s8  ;;  %p1534_p4 = scmp.lt.u32.totalorder %s1902_s27, %s1954_s3 }
 0x1d1   : > { %p1535_p8 = scmp.lt.u32.totalorder %s1533_s23, %s1529_s8  ;;  %p1537_p10 = scmp.lt.u32.totalorder %s1529_s8, %s1902_s27 }
 0x1d2   : > { %p1531_p6 = pnand %p1530_p2, %p1975_p11 }
 0x1d3   : > { %p1536_p5 = por %p1535_p8, %p1534_p4 }
 0x1d4   : > { %p1532_p12 = pneg %p1531_p6 }
 0x1d5   : > { %p1538_p1 = por %p1537_p10, %p1536_p5 }
 0x1d7   : > { %p1539_p0 = pnand %p1538_p1, %p1532_p12 }
 0x1d9   : > { %1542 = shalt.err (!%p1539_p0)
}
 0x1da   : > { %1235 = dma.vmem_to_hbm [thread:$0]  (%p1975_p11), %s1904_s6, 256, %s1902_s27, %s983_s7  }
 0x1db PF: > { %s1011_s18 = sand.u32 1, %s1581_s12   ;;  %p1976_p9 = scmp.ne.s32.totalorder %s1965_s25, 0 }
 0x1dc   : > { %p1977_p3 = scmp.ge.s32.totalorder %s1601_s17, 2  ;;  %s1012_s22 = scalar_lea.sflag [#allocation4], %s1011_s18 }
 0x1de   : > { %p1246_p7 = pnand %p1977_p3, %p1976_p9 }
 0x1e0   : > { %1576 = dma.done.wait (!%p1246_p7), %s1012_s22, 256  }
 0x1e1   : > { %1578 = vsyncadd (!%p1246_p7), %s1012_s22, 4294967040  ;;  %s20_s17 = sadd.s32 1, %s1601_s17   ;;  %s1978_s12 = smov %s1585_s13 }
 0x1e2   : > { %p17_p13 = scmp.ge.s32.totalorder %s20_s17, 4   ;;  %s1979_s13 = smov %s1589_s14 }
 0x1e3   : > { %s1980_s14 = smov %s1748_s28  ;;  %s1981_s15 = smov %s1597_s16 }
 0x1e4   : > { %s1982_s16 = smov %s1984_s4  ;;  %19 = sbr.rel (!%p17_p13) target bundleno = 7 (0x7), region = 86 }
 0x1eb   :  { %1017 = vsyncpa [#allocation3], 1 }
 0x1ec   :  { %1019 = vsyncpa [#allocation3 + $0x1], 1 }
 0x1ed   :  { %1020 = vsyncpa [#allocation6], 1 }
 0x1ee   :  { %1022 = vsyncpa [#allocation6 + $0x1], 1 }
 0x1ef   :  { %1023 = vsyncpa [#allocation4], 1 }
 0x1f0   :  { %1025 = vsyncpa [#allocation4 + $0x1], 1 }

</bundles_post_ra>
